<compile_context>
chip_gen: v6e
topology: v6e:2x2x1
jax: 0.10.0
libtpu: 0.0.40
codegen_flags: <defaults>
</compile_context>

<pallas_src>
import functools

import jax
import jax.numpy as jnp
from jax import lax
from jax.experimental import pallas as pl
from jax.experimental.pallas import tpu as pltpu

LANES = 128
SUBLANES = 8
MAX_BLOCK_ROWS = 4096   # 4096 x 128 f32 = 2 MiB per input tile per grid step
NUM_TC_SPLITS = 2       # leading "parallel" axis (used by v7x's 2 TensorCores)


def _round_up(v, m):
    return ((v + m - 1) // m) * m


def _sublane_multiple(dtype):
    itemsize = jnp.dtype(dtype).itemsize
    return max(SUBLANES, (4 // max(itemsize, 1)) * SUBLANES)  # 8/16/32


def _dice_partials_kernel(x_ref, t_ref, o_ref, acc_pt, acc_s, *,
                          rows, block_rows, blocks_per_split, apply_mask):
    i = pl.program_id(1)

    @pl.when(i == 0)
    def _init():
        acc_pt[...] = jnp.zeros_like(acc_pt)
        acc_s[...] = jnp.zeros_like(acc_s)

    # Upcast on load (inputs were DMA'd in their native dtype).
    x = x_ref[...].astype(jnp.float32)
    t = t_ref[...].astype(jnp.float32)
    p = jax.nn.sigmoid(x)

    if apply_mask:
        # Boundary blocks (and clamped duplicate blocks) contain undefined
        # data in their out-of-bounds rows: zero p and t there BEFORE they can
        # reach the accumulators, keyed on the *unclamped* grid position.
        start_row = (pl.program_id(0) * blocks_per_split + i) * block_rows
        row_ids = start_row + lax.broadcasted_iota(
            jnp.int32, (block_rows, LANES), 0)
        valid = row_ids < rows
        p = jnp.where(valid, p, 0.0)
        t = jnp.where(valid, t, 0.0)

    # Fold the (block_rows, 128) tile into (8, 128) vreg-shaped partial sums;
    # the reshape keeps (8, 128) tiles intact and the axis-0 sum is VPU adds.
    acc_pt[...] += jnp.sum((p * t).reshape(-1, SUBLANES, LANES), axis=0)
    acc_s[...] += jnp.sum((p + t).reshape(-1, SUBLANES, LANES), axis=0)

    @pl.when(i == pl.num_programs(1) - 1)
    def _finalize():
        o_ref[0, 0, :, :] = acc_pt[...]
        o_ref[0, 1, :, :] = acc_s[...]


def dice_loss(inputs, targets, smooth=1.0):
    """Pallas equivalent of DiceLoss.forward(inputs, targets, smooth)."""
    n = inputs.size
    assert targets.size == n

    x = inputs.reshape(-1)   # metadata-only
    t = targets.reshape(-1)

    sub = max(_sublane_multiple(x.dtype), _sublane_multiple(t.dtype))

    # Minimal pad only: to the next lane multiple (<= 127 elements) and to at
    # least one packed sublane tile of rows.  Block alignment is handled with
    # the in-kernel mask instead of a full-array pad copy.
    padded_n = max(_round_up(n, LANES), sub * LANES)
    pad = padded_n - n
    if pad:
        if jnp.issubdtype(x.dtype, jnp.floating):
            x_fill = -1e4                      # sigmoid -> 0
        else:
            x_fill = int(jnp.iinfo(x.dtype).min)
        x = jnp.pad(x, (0, pad), constant_values=x_fill)
        t = jnp.pad(t, (0, pad))               # zero targets contribute nothing

    rows = padded_n // LANES
    x2 = x.reshape(rows, LANES)
    t2 = t.reshape(rows, LANES)

    num_splits = NUM_TC_SPLITS if rows >= NUM_TC_SPLITS * sub else 1
    rows_per_split = pl.cdiv(rows, num_splits)
    block_rows = min(MAX_BLOCK_ROWS,
                     _round_up(rows_per_split, sub),
                     (rows // sub) * sub)       # never exceed the array rows
    blocks_per_split = pl.cdiv(rows_per_split, block_rows)
    last_block = pl.cdiv(rows, block_rows) - 1  # clamp target for index_map
    covered_rows = num_splits * blocks_per_split * block_rows
    apply_mask = covered_rows > rows

    def in_index_map(c, i):
        # Clamp so grid steps that over-cover the array re-read the last valid
        # block; the in-kernel row mask zeroes their contribution.
        return (jnp.minimum(c * blocks_per_split + i, last_block), 0)

    kernel = functools.partial(
        _dice_partials_kernel,
        rows=rows, block_rows=block_rows,
        blocks_per_split=blocks_per_split, apply_mask=apply_mask)

    partials = pl.pallas_call(
        kernel,
        out_shape=jax.ShapeDtypeStruct((num_splits, 2, SUBLANES, LANES),
                                       jnp.float32),
        grid_spec=pltpu.PrefetchScalarGridSpec(
            num_scalar_prefetch=0,
            grid=(num_splits, blocks_per_split),
            in_specs=[
                pl.BlockSpec((block_rows, LANES), in_index_map),
                pl.BlockSpec((block_rows, LANES), in_index_map),
            ],
            out_specs=pl.BlockSpec((1, 2, SUBLANES, LANES),
                                   lambda c, i: (c, 0, 0, 0)),
            scratch_shapes=[
                pltpu.VMEM((SUBLANES, LANES), jnp.float32),  # sum(p*t) partials
                pltpu.VMEM((SUBLANES, LANES), jnp.float32),  # sum(p)+sum(t)
            ],
        ),
        compiler_params=pltpu.CompilerParams(
            dimension_semantics=("parallel", "arbitrary"),
        ),
    )(x2, t2)

    # Tiny epilogue: combine per-split (8, 128) partial sums and apply dice.
    smooth = jnp.float32(smooth)
    inter = jnp.sum(partials[:, 0])
    p_plus_t = jnp.sum(partials[:, 1])
    dice = (2.0 * inter + smooth) / (p_plus_t + smooth)
    return 1.0 - dice


def _dice_loss_ref(inputs, targets, smooth=1.0):
    p = jax.nn.sigmoid(inputs.astype(jnp.float32)).reshape(-1)
    t = targets.astype(jnp.float32).reshape(-1)
    inter = jnp.sum(p * t)
    dice = (2.0 * inter + smooth) / (jnp.sum(p) + jnp.sum(t) + smooth)
    return 1.0 - dice


if __name__ == "__main__":
    key = jax.random.PRNGKey(0)
    k1, k2, k3, k4 = jax.random.split(key, 4)

    # NCHW, matching PyTorch conv-style inputs.
    B, C, H, W = 2, 4, 16, 16
    logits = jax.random.normal(k1, (B, C, H, W), dtype=jnp.float32)
    targets = (jax.random.uniform(k2, (B, C, H, W)) > 0.5).astype(jnp.float32)

    loss = jax.block_until_ready(dice_loss(logits, targets, smooth=1.0))
    ref = _dice_loss_ref(logits, targets, smooth=1.0)
    assert jnp.allclose(loss, ref, atol=1e-5, rtol=1e-5), (loss, ref)

    # Non-lane/block-aligned size: exercises the boundary-block row mask path
    # (no wrapper-side block padding).
    logits2 = jax.random.normal(k3, (2, 3, 25, 25), dtype=jnp.float32)
    targets2 = (jax.random.uniform(k4, (2, 3, 25, 25)) > 0.5).astype(jnp.float32)
    loss2 = jax.block_until_ready(dice_loss(logits2, targets2, smooth=1.0))
    ref2 = _dice_loss_ref(logits2, targets2, smooth=1.0)
    assert jnp.allclose(loss2, ref2, atol=1e-4, rtol=1e-4), (loss2, ref2)

    print("KERNEL_OK")
</pallas_src>

<mosaic_0001>
module attributes {stable_mosaic.version = 11 : i64} {
  func.func @_dice_partials_kernel(%arg0: i32, %arg1: i32, %arg2: memref<8x128xf32, #tpu.memory_space<vmem>>, %arg3: memref<8x128xf32, #tpu.memory_space<vmem>>, %arg4: memref<1x2x8x128xf32, #tpu.memory_space<vmem>>, %arg5: memref<8x128xf32, #tpu.memory_space<vmem>>, %arg6: memref<8x128xf32, #tpu.memory_space<vmem>>) attributes {dimension_semantics = [#tpu.dimension_semantics<parallel>, #tpu.dimension_semantics<arbitrary>], iteration_bounds = array<i64: 2, 1>, scalar_prefetch = 0 : i64, scratch_operands = 2 : i64, tpu.core_type = #tpu.core_type<tc>, window_params = [{transform_indices = @transform_0, window_bounds = array<i64: 8, 128>}, {transform_indices = @transform_1, window_bounds = array<i64: 8, 128>}, {transform_indices = @transform_2, window_bounds = array<i64: 1, 2, 8, 128>}]} {
    %c0_i32 = arith.constant 0 : i32
    %0 = arith.cmpi eq, %arg1, %c0_i32 : i32
    %1 = arith.extui %0 : i1 to i32
    %c0_i32_0 = arith.constant 0 : i32
    %2 = arith.cmpi ne, %1, %c0_i32_0 : i32
    scf.if %2 {
      %cst_16 = arith.constant 0.000000e+00 : f32
      %25 = vector.broadcast %cst_16 : f32 to vector<8x128xf32>
      %c0_17 = arith.constant 0 : index
      %c0_18 = arith.constant 0 : index
      %26 = vector.load %arg5[%c0_17, %c0_18] : memref<8x128xf32, #tpu.memory_space<vmem>>, vector<8x128xf32>
      tpu.vector_store %arg5[%c0_17, %c0_18], %25 {strides = array<i32>} : memref<8x128xf32, #tpu.memory_space<vmem>>, vector<8x128xf32>,
      %cst_19 = arith.constant 0.000000e+00 : f32
      %27 = vector.broadcast %cst_19 : f32 to vector<8x128xf32>
      %c0_20 = arith.constant 0 : index
      %c0_21 = arith.constant 0 : index
      %28 = vector.load %arg6[%c0_20, %c0_21] : memref<8x128xf32, #tpu.memory_space<vmem>>, vector<8x128xf32>
      tpu.vector_store %arg6[%c0_20, %c0_21], %27 {strides = array<i32>} : memref<8x128xf32, #tpu.memory_space<vmem>>, vector<8x128xf32>,
    } else {
    }
    %c0 = arith.constant 0 : index
    %c0_1 = arith.constant 0 : index
    %3 = vector.load %arg2[%c0, %c0_1] : memref<8x128xf32, #tpu.memory_space<vmem>>, vector<8x128xf32>
    %c0_2 = arith.constant 0 : index
    %c0_3 = arith.constant 0 : index
    %4 = vector.load %arg3[%c0_2, %c0_3] : memref<8x128xf32, #tpu.memory_space<vmem>>, vector<8x128xf32>
    %5 = arith.negf %3 : vector<8x128xf32>
    %6 = math.exp %5 : vector<8x128xf32>
    %cst = arith.constant 1.000000e+00 : f32
    %7 = vector.broadcast %cst : f32 to vector<8x128xf32>
    %8 = arith.addf %7, %6 : vector<8x128xf32>
    %9 = arith.divf %7, %8 : vector<8x128xf32>
    %c0_4 = arith.constant 0 : index
    %c0_5 = arith.constant 0 : index
    %10 = vector.load %arg5[%c0_4, %c0_5] : memref<8x128xf32, #tpu.memory_space<vmem>>, vector<8x128xf32>
    %11 = arith.mulf %9, %4 : vector<8x128xf32>
    %12 = vector.shape_cast %11 : vector<8x128xf32> to vector<1x8x128xf32>
    %cst_6 = arith.constant dense<0.000000e+00> : vector<8x128xf32>
    %13 = vector.multi_reduction <add>, %12, %cst_6 [0] : vector<1x8x128xf32> to vector<8x128xf32>
    %14 = arith.addf %10, %13 : vector<8x128xf32>
    %c0_7 = arith.constant 0 : index
    %c0_8 = arith.constant 0 : index
    %15 = vector.load %arg5[%c0_7, %c0_8] : memref<8x128xf32, #tpu.memory_space<vmem>>, vector<8x128xf32>
    tpu.vector_store %arg5[%c0_7, %c0_8], %14 {strides = array<i32>} : memref<8x128xf32, #tpu.memory_space<vmem>>, vector<8x128xf32>,
    %c0_9 = arith.constant 0 : index
    %c0_10 = arith.constant 0 : index
    %16 = vector.load %arg6[%c0_9, %c0_10] : memref<8x128xf32, #tpu.memory_space<vmem>>, vector<8x128xf32>
    %17 = arith.addf %9, %4 : vector<8x128xf32>
    %18 = vector.shape_cast %17 : vector<8x128xf32> to vector<1x8x128xf32>
    %cst_11 = arith.constant dense<0.000000e+00> : vector<8x128xf32>
    %19 = vector.multi_reduction <add>, %18, %cst_11 [0] : vector<1x8x128xf32> to vector<8x128xf32>
    %20 = arith.addf %16, %19 : vector<8x128xf32>
    %c0_12 = arith.constant 0 : index
    %c0_13 = arith.constant 0 : index
    %21 = vector.load %arg6[%c0_12, %c0_13] : memref<8x128xf32, #tpu.memory_space<vmem>>, vector<8x128xf32>
    tpu.vector_store %arg6[%c0_12, %c0_13], %20 {strides = array<i32>} : memref<8x128xf32, #tpu.memory_space<vmem>>, vector<8x128xf32>,
    %c0_i32_14 = arith.constant 0 : i32
    %22 = arith.cmpi eq, %arg1, %c0_i32_14 : i32
    %23 = arith.extui %22 : i1 to i32
    %c0_i32_15 = arith.constant 0 : i32
    %24 = arith.cmpi ne, %23, %c0_i32_15 : i32
    scf.if %24 {
      %c0_16 = arith.constant 0 : index
      %c0_17 = arith.constant 0 : index
      %25 = vector.load %arg5[%c0_16, %c0_17] : memref<8x128xf32, #tpu.memory_space<vmem>>, vector<8x128xf32>
      %c0_18 = arith.constant 0 : index
      %c0_19 = arith.constant 0 : index
      %c0_20 = arith.constant 0 : index
      %c0_21 = arith.constant 0 : index
      %26 = vector.load %arg4[%c0_18, %c0_19, %c0_20, %c0_21] : memref<1x2x8x128xf32, #tpu.memory_space<vmem>>, vector<1x1x8x128xf32>
      %27 = vector.shape_cast %26 : vector<1x1x8x128xf32> to vector<8x128xf32>
      %28 = vector.shape_cast %25 : vector<8x128xf32> to vector<1x1x8x128xf32>
      tpu.vector_store %arg4[%c0_18, %c0_19, %c0_20, %c0_21], %28 {strides = array<i32>} : memref<1x2x8x128xf32, #tpu.memory_space<vmem>>, vector<1x1x8x128xf32>,
      %c0_22 = arith.constant 0 : index
      %c0_23 = arith.constant 0 : index
      %29 = vector.load %arg6[%c0_22, %c0_23] : memref<8x128xf32, #tpu.memory_space<vmem>>, vector<8x128xf32>
      %c0_24 = arith.constant 0 : index
      %c1 = arith.constant 1 : index
      %c0_25 = arith.constant 0 : index
      %c0_26 = arith.constant 0 : index
      %30 = vector.load %arg4[%c0_24, %c1, %c0_25, %c0_26] : memref<1x2x8x128xf32, #tpu.memory_space<vmem>>, vector<1x1x8x128xf32>
      %31 = vector.shape_cast %30 : vector<1x1x8x128xf32> to vector<8x128xf32>
      %32 = vector.shape_cast %29 : vector<8x128xf32> to vector<1x1x8x128xf32>
      tpu.vector_store %arg4[%c0_24, %c1, %c0_25, %c0_26], %32 {strides = array<i32>} : memref<1x2x8x128xf32, #tpu.memory_space<vmem>>, vector<1x1x8x128xf32>,
    } else {
    }
    return
  }
  func.func @transform_0(%arg0: i32, %arg1: i32) -> (i32, i32) {
    %c1_i32 = arith.constant 1 : i32
    %0 = arith.muli %arg0, %c1_i32 : i32
    %1 = arith.addi %0, %arg1 : i32
    %c1_i32_0 = arith.constant 1 : i32
    %2 = arith.minsi %1, %c1_i32_0 : i32
    %c0_i32 = arith.constant 0 : i32
    %c0_i32_1 = arith.constant 0 : i32
    return %2, %c0_i32 : i32, i32
  }
  func.func @transform_1(%arg0: i32, %arg1: i32) -> (i32, i32) {
    %c1_i32 = arith.constant 1 : i32
    %0 = arith.muli %arg0, %c1_i32 : i32
    %1 = arith.addi %0, %arg1 : i32
    %c1_i32_0 = arith.constant 1 : i32
    %2 = arith.minsi %1, %c1_i32_0 : i32
    %c0_i32 = arith.constant 0 : i32
    %c0_i32_1 = arith.constant 0 : i32
    return %2, %c0_i32 : i32, i32
  }
  func.func @transform_2(%arg0: i32, %arg1: i32) -> (i32, i32, i32, i32) {
    %c0_i32 = arith.constant 0 : i32
    %c0_i32_0 = arith.constant 0 : i32
    %c0_i32_1 = arith.constant 0 : i32
    %c0_i32_2 = arith.constant 0 : i32
    return %arg0, %c0_i32, %c0_i32_0, %c0_i32_1 : i32, i32, i32, i32
  }
}

</mosaic_0001>

<bundles_post_ra>
// kernel: tpu_custom_call.1
= control target key start
LH: loop header
LB: loop body
LE: loop exit
PB: predicated region body
PF: predicated region fallthrough
CT: control target
= control target key end

     0   :  { %s892_s0 = inlined_call_operand.hbm [shape: f32[16,128], index: 0, kind: input, shape index: {}]   ;;  %s893_s1 = inlined_call_operand.hbm [shape: f32[16,128], index: 1, kind: input, shape index: {}]   ;;  %s894_s2 = inlined_call_operand.hbm [shape: f32[2,2,8,128], index: 2, kind: output, shape index: {}]  }
   0x1   :  { %895 = sst [smem:[#allocation13_spill]] %s892_s0 }
   0x2   :  { %7 = vsyncpa [#allocation5], 0 }
   0x3   :  { %9 = vsyncpa [#allocation5 + $0x1], 0 }
   0x4   :  { %10 = vsyncpa [#allocation8], 0 }
   0x5   :  { %12 = vsyncpa [#allocation8 + $0x1], 0 }
   0x6   :  { %13 = vsyncpa [#allocation6], 0 }
   0x7   :  { %15 = vsyncpa [#allocation6 + $0x1], 0  ;;  %s685_s9 = smov 0   ;;  %s687_s10 = smov 0  }
   0x8   :  { %s689_s11 = smov 0   ;;  %s691_s12 = smov 0  }
   0x9   :  { %s693_s13 = smov 0   ;;  %s695_s14 = smov 0  }
   0xa   :  { %s697_s15 = smov 0   ;;  %s699_s16 = smov 0  }
   0xb   :  { %s701_s17 = smov 0  }
   0xc LB: > { %s382_s18 = sadd.s32 4294967295, %s663_s17   ;;  %s383_s19 = sadd.s32 4294967294, %s663_s17   ;;  %s663_s17 = sphi %s701_s17, %s21_s17   ;;  %s659_s16 = sphi %s699_s16, %s911_s16   ;;  %s655_s15 = sphi %s697_s15, %s910_s15   ;;  %s651_s14 = sphi %s695_s14, %s909_s14   ;;  %s647_s13 = sphi %s693_s13, %s908_s13   ;;  %s643_s12 = sphi %s691_s12, %s907_s12   ;;  %s639_s11 = sphi %s689_s11, %s906_s11   ;;  %s635_s10 = sphi %s687_s10, %s905_s10   ;;  %s631_s9 = sphi %s685_s9, %s904_s9  }
   0xd   : > { %s33_s20 = sadd.s32 1, %s659_s16  ;;  %p38_p0 = scmp.lt.s32.totalorder %s659_s16, 1 }
   0xe   : > { %p35_p1 = scmp.ge.s32.totalorder %s33_s20, 2  ;;  %s46_s21 = sadd.s32 1, %s651_s14 }
   0xf   : > { %s734_s22 = scalar_select %p38_p0, %s659_s16, 1 }
  0x10   : > { %s913_s20 = smov (%p35_p1, %s33_s20), 0  ;;  %p53_p2 = scmp.ne.s32.totalorder %s651_s14, %s647_s13 }
  0x11   : > { %p54_p3 = scmp.eq.s32.totalorder %s663_s17, 0  ;;  %p41_p4 = scmp.lt.s32.totalorder %s913_s20, 1 }
  0x12   : > { %p59_p5 = scmp.ne.s32.totalorder %s647_s13, %s643_s12  ;;  %p60_p7 = scmp.eq.s32.totalorder %s382_s18, 0 }
  0x13   : > { %p743_p6 = por %p54_p3, %p53_p2  ;;  %s101_s26 = ssub.s32 %s659_s16, %s913_s20 }
  0x14   : > { %s42_s24 = scalar_select %p41_p4, %s913_s20, 1 }
  0x15   : > { %p748_p8 = por %p60_p7, %p59_p5  ;;  %p102_p9 = scmp.eq.s32.totalorder %s101_s26, 0 }
  0x16   : > { %s43_s27 = ssub.s32 %s734_s22, %s42_s24  ;;  %s104_s28 = sadd.s32 1, %s639_s11 }
  0x17   : > { %p44_p10 = scmp.eq.s32.totalorder %s43_s27, 0  ;;  %p114_p11 = scmp.ne.s32.totalorder %s639_s11, %s635_s10 }
  0x18   : > { %s757_s29 = scalar_select %p102_p9, %s639_s11, %s104_s28  }
  0x19   : > { %s760_s30 = scalar_select %p44_p10, %s651_s14, %s46_s21  }
  0x1a   : > { %p115_p12 = scmp.eq.s32.totalorder %s382_s18, 1  ;;  %p120_p13 = scmp.ne.s32.totalorder %s635_s10, %s631_s9 }
  0x1b   : > { %p121_p0 = scmp.eq.s32.totalorder %s383_s19, 1  ;;  %p419_p4 = scmp.lt.s32.totalorder %s663_s17, 2 }
  0x1c   : > { %p766_p1 = por %p115_p12, %p114_p11  ;;  %s777_s5 = sand.u32 1, %s651_s14  }
  0x1d   : > { %p771_p3 = por %p121_p0, %p120_p13  ;;  %s387_s6 = sshll.u32 %s734_s22, 7 }
  0x1e   : > { %s386_s7 = sshll.u32 %s777_s5, 3  ;;  %s900_s0 = sld [smem:[#allocation13_spill]] }
  0x1f   : > { %s145_s19 = scalar_lea.vmem [#allocation4], %s386_s7  ;;  %p786_p5 = pnand %p419_p4, %p743_p6 }
  0x20   : > { %s155_s21 = sshll.u32 %s145_s19, 4  ;;  %p390_p7 = scmp.ge.s32.totalorder %s663_s17, 1  ;;  %s156_s21 = int_to_ptr.vmem [resolvable:$true] %s155_s21 }
  0x21   : > { %p181_p9 = scmp.lt.s32.totalorder %s663_s17, 3  ;;  %s142_s26 = scalar_lea.sflag [#allocation5], %s777_s5 }
  0x22   : > { %p501_p10 = pneg %p786_p5  ;;  %s512_s22 = scalar_lea.vmem %s156_s21, 128 }
  0x23   : > { %p513_p11 = scmp.ne.s32.totalorder %s156_s21, %s512_s22  ;;  %s665_s27 = smov [#allocation4]  }
  0x24   : > { %s153_s18 = scalar_lea.hbm %s900_s0, %s387_s6  ;;  %s517_s23 = sshll.u32 %s665_s27, 4  ;;  %s518_s23 = int_to_ptr.vmem [resolvable:$false] %s517_s23 }
  0x25   : > { %p515_p12 = pnand %p513_p11, %p501_p10  ;;  %s519_s28 = scalar_lea.vmem %s518_s23, 256 }
  0x26   : > { %p520_p6 = scmp.lt.s32.totalorder %s156_s21, %s518_s23  ;;  %p521_p0 = scmp.lt.s32.totalorder %s519_s28, %s512_s22 }
  0x27   : > { %p516_p13 = pneg %p515_p12 }
  0x28   : > { %p522_p4 = por %p521_p0, %p520_p6 }
  0x2a   : > { %p523_p2 = pnand %p522_p4, %p516_p13 }
  0x2c   : > { %526 = shalt.err (!%p523_p2)
}
  0x2d   : > { %411 = dma.hbm_to_vmem [thread:$0]  (!%p786_p5), %s153_s18, 128, %s156_s21, %s142_s26  }
  0x2e   : > { %p804_p11 = pnand %p390_p7, %p181_p9  ;;  %s174_s22 = scalar_lea.hbm %s893_s1, %s387_s6 }
  0x2f   : > { %s166_s27 = scalar_lea.vmem [#allocation7], %s386_s7  ;;  %s163_s28 = scalar_lea.sflag [#allocation8], %s777_s5 }
  0x30   : > { %s176_s23 = sshll.u32 %s166_s27, 4  ;;  %s666_s18 = smov [#allocation7]   ;;  %s177_s23 = int_to_ptr.vmem [resolvable:$true] %s176_s23 }
  0x31   : > { %s540_s0 = scalar_lea.vmem %s177_s23, 128  ;;  %s545_s21 = sshll.u32 %s666_s18, 4  ;;  %s546_s21 = int_to_ptr.vmem [resolvable:$false] %s545_s21 }
  0x32   : > { %p541_p2 = scmp.ne.s32.totalorder %s177_s23, %s540_s0  ;;  %s547_s26 = scalar_lea.vmem %s546_s21, 256 }
  0x33   : > { %p548_p7 = scmp.lt.s32.totalorder %s177_s23, %s546_s21  ;;  %p549_p9 = scmp.lt.s32.totalorder %s547_s26, %s540_s0 }
  0x34   : > { %p543_p12 = pnand %p541_p2, %p501_p10 }
  0x35   : > { %p550_p6 = por %p549_p9, %p548_p7 }
  0x36   : > { %p544_p13 = pneg %p543_p12 }
  0x38   : > { %p551_p0 = pnand %p550_p6, %p544_p13 }
  0x3a   : > { %554 = shalt.err (!%p551_p0)
}
  0x3b   : > { %414 = dma.hbm_to_vmem [thread:$0]  (!%p786_p5), %s174_s22, 128, %s177_s23, %s163_s28  }
  0x3c   : > { %185 = sbr.rel (%p804_p11) target bundleno = 117 (0x75), region = 28  ;;  %s187_s5 = sand.u32 (!%p804_p11), 1, %s647_s13  }
  0x3d   : > { %s391_s6 = sshll.u32 (!%p804_p11), %s187_s5, 3  ;;  %s188_s7 = scalar_lea.sflag (!%p804_p11), [#allocation5], %s187_s5 }
  0x3e   : > { %s191_s12 = scalar_lea.vmem (!%p804_p11), [#allocation4], %s391_s6 }
  0x41   : > { %618 = dma.done.wait (%p748_p8), %s188_s7, 128  }
  0x42   : > { %620 = vsyncadd (%p748_p8), %s188_s7, 4294967168  ;;  %s197_s0 = scalar_lea.sflag [#allocation8], %s187_s5  ;;  %s200_s19 = scalar_lea.vmem [#allocation7], %s391_s6 }
  0x43   : > { %622 = dma.done.wait (%p748_p8), %s197_s0, 128  }
  0x44   : > { %624 = vsyncadd (%p748_p8), %s197_s0, 4294967168  ;;  %v238_v0 = vld [vmem:[%s191_s12] sm:$0xff]  ;;  %s223_s24 = sand.u32 1, %s635_s10   ;;  %s401_s22 = sshll.u32 %s655_s15, 8  ;;  %v239_v4 = vld [vmem:[%s200_s19] sm:$0xff] }
  0x45   : > { %v394_v1 = vmul.f32 -1.442695, %v238_v0  ;;  %s393_s8 = sshll.u32 %s223_s24, 4  ;;  %s833_s25 = scalar_lea.hbm %s894_s2, %s401_s22 }
  0x46   : > { %s225_s27 = scalar_lea.vmem [#allocation9], %s393_s8  ;;  %s837_s21 = scalar_lea.sflag [#allocation6], %s223_s24 }
  0x47   : > { %495 = vpow2.f32 %v394_v1  ;;  %s278_s23 = sshll.u32 %s225_s27, 4  ;;  %s667_s26 = smov [#allocation9]   ;;  %s835_s23 = int_to_ptr.vmem [resolvable:$true] %s278_s23 }
  0x48   : > { %s555_s15 = scalar_lea.vmem %s835_s23, 256  ;;  %s559_s5 = sshll.u32 %s667_s26, 4  ;;  %s560_s5 = int_to_ptr.vmem [resolvable:$false] %s559_s5 }
  0x49   : > { %p556_p8 = scmp.ne.s32.totalorder %s835_s23, %s555_s15  ;;  %s561_s6 = scalar_lea.vmem %s560_s5, 512 }
  0x4a   : > { %p562_p4 = scmp.lt.s32.totalorder %s835_s23, %s560_s5  ;;  %p563_p11 = scmp.lt.s32.totalorder %s561_s6, %s555_s15 }
  0x4b   : > { %p557_p5 = pnand %p556_p8, %p766_p1 }
  0x4c   : > { %p564_p2 = por %p563_p11, %p562_p4 }
  0x4d   : > { %p558_p10 = pneg %p557_p5 }
  0x4f   : > { %p565_p12 = pnand %p564_p2, %p558_p10 }
  0x54   : > { %v496_v2 = vpop.eup %495 }
  0x55   : > { %v243_v3 = vadd.f32 1.0, %v496_v2 }
  0x57   : > { %497 = vrcp.f32 %v243_v3 }
  0x64   : > { %v498_v5 = vpop.eup %497 }
  0x65   : > { %v247_v6 = vmul.f32 %v498_v5, %v239_v4  ;;  %v252_v7 = vadd.f32 %v498_v5, %v239_v4 }
  0x67   : > { %260 = vst [vmem:[%s225_s27] sm:$0xff] %v247_v6  ;;  %395 = vst [vmem:[%s225_s27 + $0x8] sm:$0xff] %v252_v7 }
  0x68   : > { %568 = shalt.err (!%p565_p12)
}
  0x69   : > { %s569_s7 = scalar_lea.hbm %s833_s25, 256  ;;  %s573_s19 = scalar_lea.hbm %s894_s2, 512 }
  0x6a   : > { %p570_p13 = scmp.ne.s32.totalorder %s833_s25, %s569_s7  ;;  %p574_p6 = scmp.lt.s32.totalorder %s833_s25, %s894_s2 }
  0x6b   : > { %p575_p0 = scmp.lt.s32.totalorder %s573_s19, %s569_s7 }
  0x6c   : > { %p571_p7 = pnand %p570_p13, %p766_p1 }
  0x6d   : > { %p576_p8 = por %p575_p0, %p574_p6 }
  0x6e   : > { %p572_p9 = pneg %p571_p7 }
  0x70   : > { %p577_p5 = pnand %p576_p8, %p572_p9 }
  0x72   : > { %580 = shalt.err (!%p577_p5)
}
  0x73   : > { %s668_s22 = smov 128   ;;  %s669_s27 = smov 8  }
  0x74   : > { %406 = dma.vmem_to_hbm [thread:$0]  (%p766_p1), %s835_s23, 256, %s833_s25, %s837_s21, %s668_s22, %s668_s22, %s669_s27  }
  0x75 PF: > { %s293_s28 = sand.u32 1, %s631_s9   ;;  %p903_p10 = scmp.ge.s32.totalorder %s663_s17, 2 }
  0x76   : > { %s294_s18 = scalar_lea.sflag [#allocation6], %s293_s28 }
  0x77   : > { %p416_p4 = pnand %p903_p10, %p771_p3 }
  0x79   : > { %p417_p11 = pneg %p416_p4 }
  0x7b   : > { %626 = dma.done.wait (%p417_p11), %s294_s18, 256  }
  0x7c   : > { %628 = vsyncadd (%p417_p11), %s294_s18, 4294967040  ;;  %s21_s17 = sadd.s32 1, %s663_s17   ;;  %s904_s9 = smov %s635_s10 }
  0x7d   : > { %p18_p2 = scmp.ge.s32.totalorder %s21_s17, 4   ;;  %s905_s10 = smov %s639_s11 }
  0x7e   : > { %s906_s11 = smov %s757_s29  ;;  %s907_s12 = smov %s647_s13 }
  0x7f   : > { %s908_s13 = smov %s651_s14  ;;  %s909_s14 = smov %s760_s30 }
  0x80   : > { %s910_s15 = smov %s659_s16  ;;  %s911_s16 = smov %s913_s20 }
  0x81   :  { %20 = sbr.rel (!%p18_p2) target bundleno = 12 (0xc), region = 95 }
  0x86   :  { %299 = vsyncpa [#allocation5], 1 }
  0x87   :  { %301 = vsyncpa [#allocation5 + $0x1], 1 }
  0x88   :  { %302 = vsyncpa [#allocation8], 1 }
  0x89   :  { %304 = vsyncpa [#allocation8 + $0x1], 1 }
  0x8a   :  { %305 = vsyncpa [#allocation6], 1 }
  0x8b   :  { %307 = vsyncpa [#allocation6 + $0x1], 1 }

</bundles_post_ra>
